<compile_context>
chip_gen: v6e
topology: v6e:2x2x1
jax: 0.10.0
libtpu: 0.0.40
codegen_flags: <defaults>
</compile_context>

<pallas_src>
import functools
import math

import jax
import jax.numpy as jnp
from jax.experimental import pallas as pl
from jax.experimental.pallas import tpu as pltpu


def _round_up(v, m):
    return (v + m - 1) // m * m


# ----------------------------- fused kernel ----------------------------------

def _fused_mlp_kernel(x_ref, *refs, num_hidden, output_layer):
    o_ref = refs[-1]
    params = refs[:-1]

    h = x_ref[...]                                  # (tb, in_dim) f32
    if num_hidden:
        h = h.astype(params[0].dtype)               # single operand cast

    idx = 0
    for layer in range(num_hidden):
        w = params[idx][...]                        # (in, out)  compute dtype
        shift = params[idx + 1][...]                # (1,  out)  f32 (bias+BN folded)
        idx += 2
        y = jnp.dot(h, w, preferred_element_type=jnp.float32)
        a = jnp.maximum(y + shift, 0.0)             # f32 epilogue (v5e-safe)
        # Cast for the next matmul fused into the ReLU epilogue; the last
        # hidden activation stays f32 for the f32 output projection / store.
        h = a.astype(params[0].dtype) if layer + 1 < num_hidden else a

    if output_layer:
        # Lane-dense epilogue: contract the output weights (stored as 8 rows,
        # row 0 real / rows 1..7 zero, to keep M sublane-aligned) against h's
        # feature dim, yielding a dense (1, tb) row instead of a (tb, 1)
        # masked-store column.
        w_rows = params[idx][...]                   # (8, D) f32
        b_out = params[idx + 1][...]                # (1, 1) f32
        out8 = jax.lax.dot_general(
            w_rows, h, (((1,), (1,)), ((), ())),
            preferred_element_type=jnp.float32)     # (8, tb)
        out_row = out8[0:1, :] + b_out              # (1, tb)
        o_ref[...] = out_row.reshape(o_ref.shape).astype(o_ref.dtype)
    else:
        o_ref[...] = h.astype(o_ref.dtype)


# ----------------------------- wrapper ----------------------------------------

def mlp_forward(x, hidden_params, out_params, *, tile_b=1024):
    """Fused MLP forward.

    hidden_params: list of (w_fused (in,out), shift_fused (1,out) f32)
    out_params:    (w_rows (8,in) f32 [row 0 real], b (1,1) f32) or None.
    """
    batch, in_dim = x.shape
    num_hidden = len(hidden_params)
    output_layer = out_params is not None
    if output_layer:
        out_dim = 1
    else:
        out_dim = hidden_params[-1][0].shape[1] if num_hidden else in_dim

    # --- batch tiling -----------------------------------------------------
    tile_b = _round_up(max(int(tile_b), 16), 16)
    if batch <= 16:
        tb = _round_up(max(batch, 1), 16)
    elif batch <= 2 * tile_b:
        # Split into >= 2 programs so v7x's two TensorCores both get work.
        tb = _round_up(pl.cdiv(batch, 2), 16)
    else:
        tb = tile_b
    padded = pl.cdiv(batch, tb) * tb
    grid = (padded // tb,)
    x_in = x if padded == batch else jnp.pad(x, ((0, padded - batch), (0, 0)))

    # --- specs --------------------------------------------------------------
    flat_params = []
    in_specs = [pl.BlockSpec((tb, in_dim), lambda i: (i, 0))]
    for w, shift in hidden_params:
        flat_params += [w, shift]
        in_specs += [pl.BlockSpec(w.shape, lambda i: (0, 0)),        # resident
                     pl.BlockSpec(shift.shape, lambda i: (0, 0))]
    if output_layer:
        w_rows, b_out = out_params
        flat_params += [w_rows, b_out]
        in_specs += [pl.BlockSpec(w_rows.shape, lambda i: (0, 0)),
                     pl.BlockSpec(b_out.shape, lambda i: (0, 0))]

    if output_layer:
        # Lane-dense: one (1, tb) row per tile; last two block dims == full dims.
        out_shape = jax.ShapeDtypeStruct((grid[0], 1, tb), jnp.float32)
        out_spec = pl.BlockSpec((1, 1, tb), lambda i: (i, 0, 0))
        out_tile_bytes = tb * 4
    else:
        out_shape = jax.ShapeDtypeStruct((padded, out_dim), jnp.float32)
        out_spec = pl.BlockSpec((tb, out_dim), lambda i: (i, 0))
        out_tile_bytes = tb * out_dim * 4

    # --- advisory cost estimate ---------------------------------------------
    flops = 0
    bytes_accessed = x_in.size * x_in.dtype.itemsize + padded * out_dim * 4
    dim = in_dim
    for w, shift in hidden_params:
        flops += 2 * padded * w.shape[0] * w.shape[1]
        bytes_accessed += w.size * w.dtype.itemsize + shift.size * 4
        dim = w.shape[1]
    if output_layer:
        flops += 2 * padded * dim
        bytes_accessed += (8 * dim + 1) * 4
    cost = pl.CostEstimate(flops=flops, transcendentals=0,
                           bytes_accessed=bytes_accessed)

    # --- explicit VMEM budget -------------------------------------------------
    # Double-buffered x/out tiles + (double-buffered) resident params +
    # f32/bf16 activation headroom, clamped to fit every generation (v7x 64 MiB).
    max_dim = max([in_dim] + [w.shape[1] for w, _ in hidden_params])
    weight_bytes = sum(int(p.size) * p.dtype.itemsize for p in flat_params)
    need = (2 * tb * in_dim * x_in.dtype.itemsize + 2 * out_tile_bytes
            + 2 * weight_bytes + 6 * tb * max_dim * 4 + (2 << 20))
    vmem_limit = int(min(64 * 2 ** 20, max(2 * need, 32 * 2 ** 20)))

    kernel = functools.partial(_fused_mlp_kernel, num_hidden=num_hidden,
                               output_layer=output_layer)
    out = pl.pallas_call(
        kernel,
        out_shape=out_shape,
        grid=grid,
        in_specs=in_specs,
        out_specs=out_spec,
        compiler_params=pltpu.CompilerParams(
            dimension_semantics=("parallel",),
            vmem_limit_bytes=vmem_limit),
        cost_estimate=cost,
    )(x_in, *flat_params)

    if output_layer:
        out = out.reshape(padded, 1)
    return out[:batch] if padded != batch else out


# --------------------------- module wrapper ------------------------------------

class MultiLayerPerceptron:
    """JAX/Pallas port of the PyTorch MultiLayerPerceptron (eval mode)."""

    def __init__(self, input_dim, embed_dims, dropout, output_layer=True,
                 key=jax.random.PRNGKey(0), compute_dtype=jnp.bfloat16,
                 tile_b=1024):
        del dropout  # Dropout is identity in eval mode
        # TODO(synk): training-mode BatchNorm (batch statistics) and Dropout
        # masking are not implemented; eval-mode semantics are used.
        eps = 1e-5
        self.tile_b = tile_b
        self.hidden_params = []
        self._raw_hidden = []
        in_dim = input_dim
        for embed_dim in embed_dims:
            key, kw, kb, kg, kbe, km, kv = jax.random.split(key, 7)
            lim = 1.0 / math.sqrt(in_dim)
            w = jax.random.uniform(kw, (in_dim, embed_dim), jnp.float32, -lim, lim)
            b = jax.random.uniform(kb, (embed_dim,), jnp.float32, -lim, lim)
            gamma = 1.0 + 0.1 * jax.random.normal(kg, (embed_dim,), jnp.float32)
            beta = 0.1 * jax.random.normal(kbe, (embed_dim,), jnp.float32)
            running_mean = 0.1 * jax.random.normal(km, (embed_dim,), jnp.float32)
            running_var = 1.0 + 0.1 * jax.random.uniform(kv, (embed_dim,),
                                                         jnp.float32)
            scale = gamma / jnp.sqrt(running_var + eps)
            shift = beta - running_mean * scale
            # Fold Linear bias + eval-mode BatchNorm into the weights.
            w_fused = (w * scale[None, :]).astype(compute_dtype)
            shift_fused = (shift + b * scale).reshape(1, -1).astype(jnp.float32)
            self.hidden_params.append((w_fused, shift_fused))
            self._raw_hidden.append((w, b, scale, shift))
            in_dim = embed_dim
        self.out_params = None
        self._raw_out = None
        if output_layer:
            key, kw, kb = jax.random.split(key, 3)
            lim = 1.0 / math.sqrt(in_dim)
            w = jax.random.uniform(kw, (in_dim, 1), jnp.float32, -lim, lim)
            b = jax.random.uniform(kb, (1,), jnp.float32, -lim, lim)
            # Store the output weights as 8 sublane-aligned rows (row 0 real,
            # rows 1..7 zero) so the in-kernel lane-dense projection uses an
            # aligned M; f32 to keep the final projection exact.
            w_rows = jnp.zeros((8, in_dim), jnp.float32).at[0].set(w[:, 0])
            self.out_params = (w_rows, b.reshape(1, 1).astype(jnp.float32))
            self._raw_out = (w, b)

    def __call__(self, x):
        return mlp_forward(x, self.hidden_params, self.out_params,
                           tile_b=self.tile_b)


# ------------------------------- main -------------------------------------------

if __name__ == "__main__":
    key = jax.random.PRNGKey(0)
    k_x, k_p, k_x2 = jax.random.split(key, 3)

    batch, input_dim = 8, 32
    embed_dims = (64, 32)
    dropout = 0.2

    x = jax.random.normal(k_x, (batch, input_dim), jnp.float32)

    # Pure-JAX reference using the *unfolded* params (also checks the folding).
    def reference(model, xv):
        ref = xv
        for w, b, scale, shift in model._raw_hidden:
            ref = jnp.maximum((ref @ w + b) * scale + shift, 0.0)
        if model._raw_out is not None:
            w, b = model._raw_out
            ref = ref @ w + b
        return ref

    # Default path: bf16 MXU operands, f32 accumulation + epilogue.
    mlp = MultiLayerPerceptron(input_dim, embed_dims, dropout,
                               output_layer=True, key=k_p)
    out = mlp(x)
    jax.block_until_ready(out)
    assert out.shape == (batch, 1), out.shape
    assert out.dtype == jnp.float32
    ref = reference(mlp, x)
    assert jnp.allclose(out, ref, atol=5e-2, rtol=5e-2), (
        float(jnp.max(jnp.abs(out - ref))))

    # f32 operand path: tight check of the BN/bias folding + kernel math.
    mlp_f32 = MultiLayerPerceptron(input_dim, embed_dims, dropout,
                                   output_layer=True, key=k_p,
                                   compute_dtype=jnp.float32)
    out_f32 = mlp_f32(x)
    jax.block_until_ready(out_f32)
    assert jnp.allclose(out_f32, reference(mlp_f32, x), atol=2e-5, rtol=2e-5), (
        float(jnp.max(jnp.abs(out_f32 - reference(mlp_f32, x)))))

    # Larger batch: exercises the multi-program "parallel" grid (2 tiles, row
    # padding) and the lane-dense per-tile output rows.
    x_big = jax.random.normal(k_x2, (300, input_dim), jnp.float32)
    out_big = mlp_f32(x_big)
    jax.block_until_ready(out_big)
    assert out_big.shape == (300, 1)
    assert jnp.allclose(out_big, reference(mlp_f32, x_big), atol=2e-5, rtol=2e-5)

    # No-output-layer variant (returns the last hidden activation).
    mlp_feat = MultiLayerPerceptron(input_dim, embed_dims, dropout,
                                    output_layer=False, key=k_p,
                                    compute_dtype=jnp.float32)
    out_feat = mlp_feat(x)
    jax.block_until_ready(out_feat)
    assert out_feat.shape == (batch, embed_dims[-1])
    assert jnp.allclose(out_feat, reference(mlp_feat, x), atol=2e-5, rtol=2e-5)

    print("KERNEL_OK")
</pallas_src>

<mosaic_0001>
module attributes {stable_mosaic.version = 11 : i64} {
  func.func @_fused_mlp_kernel(%arg0: i32, %arg1: memref<16x32xf32, #tpu.memory_space<vmem>>, %arg2: memref<32x64xbf16, #tpu.memory_space<vmem>>, %arg3: memref<1x64xf32, #tpu.memory_space<vmem>>, %arg4: memref<64x32xbf16, #tpu.memory_space<vmem>>, %arg5: memref<1x32xf32, #tpu.memory_space<vmem>>, %arg6: memref<8x32xf32, #tpu.memory_space<vmem>>, %arg7: memref<1x1xf32, #tpu.memory_space<vmem>>, %arg8: memref<1x1x16xf32, #tpu.memory_space<vmem>>) attributes {dimension_semantics = [#tpu.dimension_semantics<parallel>], iteration_bounds = array<i64: 1>, scalar_prefetch = 0 : i64, scratch_operands = 0 : i64, tpu.core_type = #tpu.core_type<tc>, window_params = [{transform_indices = @transform_0, window_bounds = array<i64: 16, 32>}, {pipeline_mode = #tpu.pipeline_mode<synchronous>, transform_indices = @transform_1, window_bounds = array<i64: 32, 64>}, {pipeline_mode = #tpu.pipeline_mode<synchronous>, transform_indices = @transform_2, window_bounds = array<i64: 1, 64>}, {pipeline_mode = #tpu.pipeline_mode<synchronous>, transform_indices = @transform_3, window_bounds = array<i64: 64, 32>}, {pipeline_mode = #tpu.pipeline_mode<synchronous>, transform_indices = @transform_4, window_bounds = array<i64: 1, 32>}, {pipeline_mode = #tpu.pipeline_mode<synchronous>, transform_indices = @transform_5, window_bounds = array<i64: 8, 32>}, {pipeline_mode = #tpu.pipeline_mode<synchronous>, transform_indices = @transform_6, window_bounds = array<i64: 1, 1>}, {transform_indices = @transform_7, window_bounds = array<i64: 1, 1, 16>}]} {
    %c0 = arith.constant 0 : index
    %c0_0 = arith.constant 0 : index
    %0 = vector.load %arg1[%c0, %c0_0] : memref<16x32xf32, #tpu.memory_space<vmem>>, vector<16x32xf32>
    %1 = arith.truncf %0 : vector<16x32xf32> to vector<16x32xbf16>
    %c0_1 = arith.constant 0 : index
    %c0_2 = arith.constant 0 : index
    %2 = vector.load %arg2[%c0_1, %c0_2] : memref<32x64xbf16, #tpu.memory_space<vmem>>, vector<32x64xbf16>
    %c0_3 = arith.constant 0 : index
    %c0_4 = arith.constant 0 : index
    %3 = vector.load %arg3[%c0_3, %c0_4] : memref<1x64xf32, #tpu.memory_space<vmem>>, vector<1x64xf32>
    %cst = arith.constant dense<0.000000e+00> : vector<16x64xf32>
    %4 = tpu.matmul %1, %2, %cst {dimension_numbers = #tpu.dot_dimension_numbers<[1], [0], [0], [1], [0, 0, 1, 1], [], []>} : vector<16x32xbf16>, vector<32x64xbf16>, vector<16x64xf32> -> vector<16x64xf32>
    %5 = vector.broadcast %3 : vector<1x64xf32> to vector<16x64xf32>
    %6 = arith.addf %4, %5 : vector<16x64xf32>
    %cst_5 = arith.constant 0.000000e+00 : f32
    %7 = vector.broadcast %cst_5 : f32 to vector<16x64xf32>
    %8 = arith.maximumf %6, %7 : vector<16x64xf32>
    %9 = arith.truncf %8 : vector<16x64xf32> to vector<16x64xbf16>
    %c0_6 = arith.constant 0 : index
    %c0_7 = arith.constant 0 : index
    %10 = vector.load %arg4[%c0_6, %c0_7] : memref<64x32xbf16, #tpu.memory_space<vmem>>, vector<64x32xbf16>
    %c0_8 = arith.constant 0 : index
    %c0_9 = arith.constant 0 : index
    %11 = vector.load %arg5[%c0_8, %c0_9] : memref<1x32xf32, #tpu.memory_space<vmem>>, vector<1x32xf32>
    %cst_10 = arith.constant dense<0.000000e+00> : vector<16x32xf32>
    %12 = tpu.matmul %9, %10, %cst_10 {dimension_numbers = #tpu.dot_dimension_numbers<[1], [0], [0], [1], [0, 0, 1, 1], [], []>} : vector<16x64xbf16>, vector<64x32xbf16>, vector<16x32xf32> -> vector<16x32xf32>
    %13 = vector.broadcast %11 : vector<1x32xf32> to vector<16x32xf32>
    %14 = arith.addf %12, %13 : vector<16x32xf32>
    %cst_11 = arith.constant 0.000000e+00 : f32
    %15 = vector.broadcast %cst_11 : f32 to vector<16x32xf32>
    %16 = arith.maximumf %14, %15 : vector<16x32xf32>
    %c0_12 = arith.constant 0 : index
    %c0_13 = arith.constant 0 : index
    %17 = vector.load %arg6[%c0_12, %c0_13] : memref<8x32xf32, #tpu.memory_space<vmem>>, vector<8x32xf32>
    %c0_14 = arith.constant 0 : index
    %c0_15 = arith.constant 0 : index
    %18 = vector.load %arg7[%c0_14, %c0_15] : memref<1x1xf32, #tpu.memory_space<vmem>>, vector<1x1xf32>
    %cst_16 = arith.constant dense<0.000000e+00> : vector<8x16xf32>
    %19 = tpu.matmul %17, %16, %cst_16 {dimension_numbers = #tpu.dot_dimension_numbers<[1], [1], [0], [0], [0, 0, 1, 0], [], []>} : vector<8x32xf32>, vector<16x32xf32>, vector<8x16xf32> -> vector<8x16xf32>
    %20 = vector.extract_strided_slice %19 {offsets = [0, 0], sizes = [1, 16], strides = [1, 1]} : vector<8x16xf32> to vector<1x16xf32>
    %21 = vector.broadcast %18 : vector<1x1xf32> to vector<1x16xf32>
    %22 = arith.addf %20, %21 : vector<1x16xf32>
    %23 = vector.shape_cast %22 : vector<1x16xf32> to vector<1x1x16xf32>
    %c0_17 = arith.constant 0 : index
    %c0_18 = arith.constant 0 : index
    %c0_19 = arith.constant 0 : index
    %24 = vector.load %arg8[%c0_17, %c0_18, %c0_19] : memref<1x1x16xf32, #tpu.memory_space<vmem>>, vector<1x1x16xf32>
    tpu.vector_store %arg8[%c0_17, %c0_18, %c0_19], %23 {strides = array<i32>} : memref<1x1x16xf32, #tpu.memory_space<vmem>>, vector<1x1x16xf32>,
    return
  }
  func.func @transform_0(%arg0: i32) -> (i32, i32) {
    %c0_i32 = arith.constant 0 : i32
    %c0_i32_0 = arith.constant 0 : i32
    return %arg0, %c0_i32 : i32, i32
  }
  func.func @transform_1(%arg0: i32) -> (i32, i32) {
    %c0_i32 = arith.constant 0 : i32
    %c0_i32_0 = arith.constant 0 : i32
    %c0_i32_1 = arith.constant 0 : i32
    return %c0_i32, %c0_i32_0 : i32, i32
  }
  func.func @transform_2(%arg0: i32) -> (i32, i32) {
    %c0_i32 = arith.constant 0 : i32
    %c0_i32_0 = arith.constant 0 : i32
    %c0_i32_1 = arith.constant 0 : i32
    return %c0_i32, %c0_i32_0 : i32, i32
  }
  func.func @transform_3(%arg0: i32) -> (i32, i32) {
    %c0_i32 = arith.constant 0 : i32
    %c0_i32_0 = arith.constant 0 : i32
    %c0_i32_1 = arith.constant 0 : i32
    return %c0_i32, %c0_i32_0 : i32, i32
  }
  func.func @transform_4(%arg0: i32) -> (i32, i32) {
    %c0_i32 = arith.constant 0 : i32
    %c0_i32_0 = arith.constant 0 : i32
    %c0_i32_1 = arith.constant 0 : i32
    return %c0_i32, %c0_i32_0 : i32, i32
  }
  func.func @transform_5(%arg0: i32) -> (i32, i32) {
    %c0_i32 = arith.constant 0 : i32
    %c0_i32_0 = arith.constant 0 : i32
    %c0_i32_1 = arith.constant 0 : i32
    return %c0_i32, %c0_i32_0 : i32, i32
  }
  func.func @transform_6(%arg0: i32) -> (i32, i32) {
    %c0_i32 = arith.constant 0 : i32
    %c0_i32_0 = arith.constant 0 : i32
    %c0_i32_1 = arith.constant 0 : i32
    return %c0_i32, %c0_i32_0 : i32, i32
  }
  func.func @transform_7(%arg0: i32) -> (i32, i32, i32) {
    %c0_i32 = arith.constant 0 : i32
    %c0_i32_0 = arith.constant 0 : i32
    %c0_i32_1 = arith.constant 0 : i32
    return %arg0, %c0_i32, %c0_i32_0 : i32, i32, i32
  }
}

</mosaic_0001>

<bundles_post_ra>
// kernel: tpu_custom_call.1
= control target key start
LH: loop header
LB: loop body
LE: loop exit
PB: predicated region body
PF: predicated region fallthrough
CT: control target
= control target key end

     0   :  { %s468_s0 = inlined_call_operand.vmem [shape: f32[16,32], index: 0, kind: input, shape index: {}]   ;;  %s469_s1 = inlined_call_operand.vmem [shape: bf16[32,64], index: 1, kind: input, shape index: {}]   ;;  %s470_s2 = inlined_call_operand.vmem [shape: f32[1,64], index: 2, kind: input, shape index: {}]   ;;  %s471_s3 = inlined_call_operand.vmem [shape: bf16[64,32], index: 3, kind: input, shape index: {}]   ;;  %s472_s4 = inlined_call_operand.vmem [shape: f32[1,32], index: 4, kind: input, shape index: {}]   ;;  %s473_s5 = inlined_call_operand.vmem [shape: f32[8,32], index: 5, kind: input, shape index: {}]   ;;  %s474_s6 = inlined_call_operand.<no memory space> [shape: f32[1,1], index: 6, kind: input, shape index: {}]   ;;  %s475_s7 = inlined_call_operand.hbm [shape: f32[1,1,16], index: 7, kind: output, shape index: {}]  }
   0x1   :  { %v12_v0 = vstv %s474_s6 }
   0x2   :  { %13 = vst [vmem:[#allocation2] sm:$0x1] %v12_v0 }
   0x3   :  { %v353_v1 = vld [vmem:[%s469_s1 + $0x8] sm:$0xff]   ;;  %v381_v2 = vmov 0.0   ;;  %v354_v3 = vld [vmem:[%s469_s1] sm:$0xff]   ;;  %vm382_vm0 = vmmov 0   ;;  %v355_v6 = vld [vmem:[%s471_s3 + $0x18] sm:$0xff]   ;;  %vm56_vm1 = vcmask 261120  }
   0x4   :  { %321 = vmatprep.subr.bf16.mxu0 %v381_v2  ;;  %329 = vmatprep.subr.bf16.mxu1 %v381_v2  ;;  %v30_v4 = vld [vmem:[%s468_s0] sm:$0xff]  ;;  %v31_v5 = vld [vmem:[%s468_s0 + $0x8] sm:$0xff] }
   0x5   :  { %322 = vmatpush3.bf16.msra.mxu0 %v353_v1  ;;  %325 = vmatprep.mubr.msk.bf16.mxu0 %vm382_vm0, %v381_v2  ;;  %v32_v7 = vpack.c.bf16 %v31_v5, %v30_v4 }
   0x6   :  { %323 = vmatprep.subr.bf16.mxu0 %v381_v2  ;;  %337 = vmatprep.mubr.msk.bf16.mxu1 %vm382_vm0, %v381_v2 }
   0x7   :  { %330 = vmatpush3.bf16.msra.mxu1 %v355_v6 }
   0x8   :  { %331 = vmatprep.subr.bf16.mxu1 %v381_v2 }
   0x9   :  { %324 = vmatpush3.bf16.msra.mxu0 %v354_v3 }
   0xa   :  { %14 = vsyncpa [#allocation4], 0  ;;  %341 = vmatprep.subr.mxu0 %v381_v2  ;;  %v356_v8 = vld [vmem:[%s471_s3 + $0x10] sm:$0xff]   ;;  %v357_v9 = vld [vmem:[%s471_s3 + $0x8] sm:$0xff]   ;;  %vm143_vm2 = vcmask 523264   ;;  %v383_v22 = vmov 0   ;;  %v276_v33 = vlaneseq }
   0xb   :  { %332 = vmatpush3.bf16.msra.mxu1 %v356_v8  ;;  %v358_v10 = vld [vmem:[%s471_s3] sm:$0xff]   ;;  %352 = vset.pattern.permute.xlu0 %v383_v22  ;;  %vm281_vm3 = vcmask 122880  }
   0xc   :  { %326 = vmatmul.mubr.msk.bf16.vlgmr.msra.gmra.mxu0 %vm56_vm1, %v32_v7  ;;  %333 = vmatprep.subr.bf16.mxu1 %v381_v2  ;;  %v297_v11 = vld [vmem:[%s470_s2] ss:$0 sm:$0xff]  ;;  %v277_v34 = vshrl.u32 %v276_v33, 7 }
   0xd   :  { %345 = vmatprep.mubr.msk.f32.mxu0 %vm382_vm0, %v381_v2  ;;  %v191_v21 = vld [vmem:[#allocation2] sm:$0x1] }
   0xe   :  { %273 = vperm.xlu0 %352, %v191_v21   ;;  %v301_v25 = vld [vmem:[%s472_s4] ss:$0 sm:$0xff]  ;;  %v278_v35 = vsub.s32 0, %v277_v34  ;;  %s384_s4 = smov [#allocation3]  }
   0xf   :  { %334 = vmatpush3.bf16.msra.mxu1 %v357_v9  ;;  %v190_v32 = vld [vmem:[%s473_s5] sm:$0xff]  ;;  %s289_s20 = sshll.u32 %s384_s4, 4  ;;  %s290_s20 = int_to_ptr.vmem [resolvable:$true] %s289_s20 }
  0x10   :  { %335 = vmatprep.subr.bf16.mxu1 %v381_v2  ;;  %s359_s21 = scalar_lea.vmem %s290_s20, 16  ;;  %s363_s22 = scalar_lea.vmem %s290_s20, 32 }
  0x11   :  { %p360_p0 = scmp.ne.s32.totalorder %s290_s20, %s359_s21  ;;  %p364_p1 = scmp.lt.s32.totalorder %s290_s20, %s290_s20 }
  0x12   :  { %p365_p2 = scmp.lt.s32.totalorder %s363_s22, %s359_s21 }
  0x13   :  { %336 = vmatpush3.bf16.msra.mxu1 %v358_v10 }
  0x14   :  { %p366_p3 = por %p365_p2, %p364_p1 }
  0x16   :  { %p367_p4 = pnand %p366_p3, %p360_p0 }
  0x89   :  { %v274_v36 = vpop.permute.xlu0 %273 }
  0x8a   :  { %v279_v37 = vrot.slane %v274_v36, %v278_v35 }
  0xcc   :  { %v94_v12 = vpop.f32.mrf.mxu0 }
  0xcd   :  { %v95_v14 = vadd.f32 %v297_v11, %v94_v12 }
  0xce   :  { %v327_v13 = vpop.f32.mrf.mxu0 }
  0xcf   :  { %v101_v18 = vmax.f32 %v95_v14, 0.0 }
  0xd0   :  { %v97_v15 = vpop.f32.mrf.mxu0 }
  0xd1   :  { %v98_v16 = vadd.f32 %v297_v11, %v97_v15 }
  0xd2   :  { %v328_v17 = vpop.f32.mrf.mxu0 }
  0xd3   :  { %v102_v19 = vmax.f32 %v98_v16, 0.0 }
  0xd5   :  { %v103_v20 = vpack.c.bf16 %v102_v19, %v101_v18 }
  0xd7   :  { %338 = vmatmul.mubr.msk.bf16.vlgmr.msra.gmra.mxu1 %vm143_vm2, %v103_v20 }
 0x197   :  { %v181_v23 = vpop.f32.mrf.mxu1 }
 0x198   :  { %v182_v29 = vadd.f32 %v301_v25, %v181_v23 }
 0x199   :  { %v339_v24 = vpop.f32.mrf.mxu1 }
 0x19a   :  { %v188_v31 = vmax.f32 %v182_v29, 0.0 }
 0x19b   :  { %v184_v26 = vpop.f32.mrf.mxu1 }
 0x19c   :  { %v185_v27 = vadd.f32 %v301_v25, %v184_v26 }
 0x19d   :  { %v340_v28 = vpop.f32.mrf.mxu1 }
 0x19e   :  { %v189_v30 = vmax.f32 %v185_v27, 0.0 }
 0x1a0   :  { %342 = vmatpush3.xpose.msk.msra.mxu0 %vm56_vm1, %v189_v30 }
 0x1a1   :  { %343 = vmatprep.subr.mxu0 %v381_v2 }
 0x1a4   :  { %344 = vmatpush3.xpose.msk.msra.mxu0 %vm56_vm1, %v188_v31 }
 0x1a7   :  { %346 = vmatmul.mubr.msk.f32.vlgmr.msra.gmra.mxu0 %vm56_vm1, %v190_v32 }
 0x267   :  { %v267_v38 = vpop.f32.mrf.mxu0 }
 0x268   :  { %v280_v39 = vadd.f32 %v279_v37, %v267_v38 }
 0x269   :  { %v347_v40 = vpop.f32.mrf.mxu0 }
 0x26a   :  { %282 = vst.msk [vmem:[#allocation3] sm:$0x1] %vm281_vm3, %v280_v39 }
 0x26b   :  { %370 = shalt.err (!%p367_p4)
}
 0x26c   :  { %292 = dma.vmem_to_hbm [thread:$0]  %s290_s20, 16, %s475_s7, [#allocation4]  }
 0x26d   :  { %379 = dma.done.wait [#allocation4], 16  }
 0x26e   :  { %380 = vsyncadd [#allocation4], 4294967280 }
 0x26f   :  { %296 = vsyncpa [#allocation4], 1 }

</bundles_post_ra>
